<compile_context>
chip_gen: v7x
topology: tpu7x:2x2x1
jax: 0.10.0
libtpu: 0.0.40
codegen_flags: <defaults>
</compile_context>

<pallas_src>
import functools

import jax
import jax.numpy as jnp
from jax.experimental import pallas as pl
from jax.experimental.pallas import tpu as pltpu

# -------- synthetic cfg.MODEL.SEG constants (deterministic, in-script) --------
BINARY_THRESH = 0.5
USE_MULTIPLE_THRESH = True
MULTIPLE_THRESH = (0.2, 0.3, 0.4, 0.5)
TOP_N_TEST = 1000  # host-side box truncation only; no device compute

# Dispatch heuristic: below this element count (or for non-lane-dense widths)
# a fused XLA broadcast compare beats a Pallas kernel launch.
_MIN_PALLAS_ELEMS = 128 * 128


def _vmem_budget_bytes():
    """(pipeline_budget, vmem_limit) derived from the chip generation.

    pipeline_budget bounds the double-buffered in+out tile footprint
    (2 * tile_h * W * (4 + n_out_planes) bytes); vmem_limit is passed to the
    compiler so the budget (plus internal scratch headroom) actually fits the
    scoped VMEM window on every generation (v5e default is only 16 MiB).
    """
    cap = None
    try:
        info = pltpu.get_tpu_info()
        cap = getattr(info, "vmem_capacity_bytes", None)
    except Exception:
        cap = None
    if not cap:
        cap = 64 << 20  # conservative default == v7x per-TC physical VMEM
    budget = min(cap // 3, 40 << 20)          # 40 MiB on 128-MiB parts, ~21 MiB on v7x
    vmem_limit = min(budget + (16 << 20), cap - (8 << 20))
    return int(budget), int(vmem_limit)


def _pick_tile_h(H, W, n_out_planes, budget_bytes):
    """Largest multiple-of-32 row tile whose double-buffered footprint fits.

    Per grid step the pipeline holds two copies of (f32 input tile + uint8
    output tiles): 2 * tile_h * W * (4 + n_out_planes) bytes.
    """
    per_row = 2 * W * (4 + n_out_planes)
    tile_h = budget_bytes // per_row
    tile_h = max(32, (tile_h // 32) * 32)
    cap = max(32, ((H + 31) // 32) * 32)      # never bigger than (rounded-up) H
    return min(tile_h, cap)


def _binarize_kernel(pred_ref, out_ref, *, thresholds):
    """One (image, row-tile) per grid step.

    pred_ref: (1, TILE_H, W)    float32 VMEM block
    out_ref : (1, T, TILE_H, W) uint8   VMEM block ({0,1} mask, cv2-ready)
    """
    x = pred_ref[0]  # load tile once, reuse for all T compares
    for t, thr in enumerate(thresholds):  # static unroll over config constants
        out_ref[0, t, :, :] = (x > thr).astype(jnp.uint8)


def _level_map_kernel(pred_ref, out_ref, *, thresholds):
    """Monotone-threshold variant: one uint8 'levels exceeded' map per pixel.

    pred_ref: (1, TILE_H, W)    float32
    out_ref : (1, 1, TILE_H, W) uint8, value = #{t : pred > t}
    Host recovers plane i (thresholds ascending) as (level > i).
    """
    x = pred_ref[0]
    level = jnp.zeros(x.shape, dtype=jnp.int32)
    for thr in thresholds:
        level = level + (x > thr).astype(jnp.int32)
    out_ref[0, 0, :, :] = level.astype(jnp.uint8)


def binarize(pred, thresholds, *, emit_level_map=False, tile_h=None):
    """Pallas equivalent of SEGPostProcessor.binarize.

    pred: (N, 1, H, W) float32
    returns (emit_level_map=False): (N, T, H, W) uint8 {0,1} bitmap
            (nonzero == `pred > t`; identical pixel semantics to the torch bool
             tensor — host pipeline consumes it as uint8 for cv2).
    returns (emit_level_map=True):  (N, 1, H, W) uint8 threshold-count map
            (plane i of the torch output == level > i, thresholds ascending).
    """
    N, C, H, W = pred.shape
    assert C == 1, "SEG head emits a single-channel map"
    thr_vals = tuple(float(t) for t in thresholds)
    T = len(thr_vals)
    if emit_level_map:
        assert all(thr_vals[i] < thr_vals[i + 1] for i in range(T - 1)), (
            "level-map output requires strictly increasing thresholds")

    lane_dense = (W % 128 == 0)
    if (not lane_dense) or (H * W < _MIN_PALLAS_ELEMS):
        # Tiny / awkward shapes: a single fused XLA op beats kernel-launch +
        # masked-store overhead.
        thr = jnp.asarray(thr_vals, dtype=pred.dtype).reshape(1, T, 1, 1)
        planes = (pred > thr).astype(jnp.uint8)
        if emit_level_map:
            return planes.astype(jnp.int32).sum(axis=1, keepdims=True).astype(jnp.uint8)
        return planes

    pred2 = pred.reshape(N, H, W)  # glue: squeeze the singleton channel
    n_out_planes = 1 if emit_level_map else T
    budget, vmem_limit = _vmem_budget_bytes()
    if tile_h is None:
        tile_h = _pick_tile_h(H, W, n_out_planes, budget)
    grid = (N, pl.cdiv(H, tile_h))  # last row-tile may be partial

    if emit_level_map:
        kern = functools.partial(_level_map_kernel, thresholds=thr_vals)
    else:
        kern = functools.partial(_binarize_kernel, thresholds=thr_vals)

    return pl.pallas_call(
        kern,
        out_shape=jax.ShapeDtypeStruct((N, n_out_planes, H, W), jnp.uint8),
        grid_spec=pltpu.PrefetchScalarGridSpec(
            num_scalar_prefetch=0,
            grid=grid,
            in_specs=[pl.BlockSpec((1, tile_h, W), lambda n, h: (n, h, 0))],
            out_specs=pl.BlockSpec((1, n_out_planes, tile_h, W),
                                   lambda n, h: (n, 0, h, 0)),
        ),
        compiler_params=pltpu.CompilerParams(
            # Fully elementwise: every grid point writes a disjoint output tile,
            # so both axes may shard across TensorCores (v7x megacore).
            dimension_semantics=("parallel", "parallel"),
            vmem_limit_bytes=vmem_limit,
        ),
    )(pred2)


def seg_postprocessor_forward(seg_output, image_shapes):
    """Device portion of SEGPostProcessor.forward_for_single_feature_map.

    Produces the binarized bitmap(s) as a {0,1} uint8 map (exactly what the
    host path feeds to `(bitmap * 255).astype(np.uint8)` for cv2).
    """
    thresholds = MULTIPLE_THRESH if USE_MULTIPLE_THRESH else (BINARY_THRESH,)
    bitmap = binarize(seg_output, thresholds)
    # TODO(synk): boxes_from_bitmap / get_mini_boxes / unclip / box_score_fast /
    # aug_tensor_proposals / BoxList plumbing need cv2, pyclipper and shapely —
    # host only, no Pallas equivalent; they consume `bitmap` on host.
    return bitmap


if __name__ == "__main__":
    key = jax.random.PRNGKey(0)
    thresholds = MULTIPLE_THRESH if USE_MULTIPLE_THRESH else (BINARY_THRESH,)

    # 1) Small but lane-dense map exercising the Pallas path.
    N, C, H, W = 2, 1, 128, 128
    pred = jax.nn.sigmoid(jax.random.normal(key, (N, C, H, W), dtype=jnp.float32))
    image_shapes = [(H, W)] * N  # host-side metadata only

    bitmap = jax.block_until_ready(seg_postprocessor_forward(pred, image_shapes))
    ref = jnp.concatenate([pred > t for t in thresholds], axis=1)
    assert bitmap.dtype == jnp.uint8 and bitmap.shape == ref.shape
    assert bool(jnp.all(bitmap.astype(jnp.bool_) == ref))

    # 2) Non-divisible height + forced small tile: exercises the cdiv grid with
    #    a partial last row-block (H=200, tile_h=96 -> blocks 96/96/partial-8).
    pred_odd = jax.nn.sigmoid(
        jax.random.normal(jax.random.PRNGKey(2), (2, 1, 200, 128), dtype=jnp.float32))
    bm_odd = jax.block_until_ready(binarize(pred_odd, thresholds, tile_h=96))
    ref_odd = jnp.concatenate([pred_odd > t for t in thresholds], axis=1)
    assert bool(jnp.all(bm_odd.astype(jnp.bool_) == ref_odd))

    # 3) Optional level-map contract (monotone thresholds -> 1 byte/elem writes).
    level = jax.block_until_ready(binarize(pred, thresholds, emit_level_map=True))
    assert level.shape == (N, 1, H, W) and level.dtype == jnp.uint8
    for i in range(len(thresholds)):
        assert bool(jnp.all((level[:, 0] > i) == ref[:, i]))

    # 4) Degenerate toy map (16x16): fused-XLA fallback path.
    small = jax.nn.sigmoid(
        jax.random.normal(jax.random.PRNGKey(1), (2, 1, 16, 16), dtype=jnp.float32))
    small_bm = jax.block_until_ready(binarize(small, thresholds))
    small_ref = jnp.concatenate([small > t for t in thresholds], axis=1)
    assert small_bm.dtype == jnp.uint8
    assert bool(jnp.all(small_bm.astype(jnp.bool_) == small_ref))

    print("KERNEL_OK")
</pallas_src>

<mosaic_0001>
module attributes {stable_mosaic.version = 11 : i64} {
  func.func @_binarize_kernel(%arg0: i32, %arg1: i32, %arg2: memref<1x128x128xf32, #tpu.memory_space<vmem>>, %arg3: memref<1x4x128x128xi8, #tpu.memory_space<vmem>>) attributes {dimension_semantics = [#tpu.dimension_semantics<parallel>, #tpu.dimension_semantics<parallel>], iteration_bounds = array<i64: 2, 1>, scalar_prefetch = 0 : i64, scratch_operands = 0 : i64, tpu.core_type = #tpu.core_type<tc>, window_params = [{transform_indices = @transform_0, window_bounds = array<i64: 1, 128, 128>}, {transform_indices = @transform_1, window_bounds = array<i64: 1, 4, 128, 128>}]} {
    %c0 = arith.constant 0 : index
    %c0_0 = arith.constant 0 : index
    %c0_1 = arith.constant 0 : index
    %0 = vector.load %arg2[%c0, %c0_0, %c0_1] : memref<1x128x128xf32, #tpu.memory_space<vmem>>, vector<1x128x128xf32>
    %1 = vector.shape_cast %0 : vector<1x128x128xf32> to vector<128x128xf32>
    %cst = arith.constant 2.000000e-01 : f32
    %2 = vector.broadcast %cst : f32 to vector<128x128xf32>
    %3 = arith.cmpf ogt, %1, %2 : vector<128x128xf32>
    %4 = arith.extui %3 : vector<128x128xi1> to vector<128x128xi8>
    %c0_2 = arith.constant 0 : index
    %c0_3 = arith.constant 0 : index
    %c0_4 = arith.constant 0 : index
    %c0_5 = arith.constant 0 : index
    %5 = vector.load %arg3[%c0_2, %c0_3, %c0_4, %c0_5] : memref<1x4x128x128xi8, #tpu.memory_space<vmem>>, vector<1x1x128x128xi8>
    %6 = vector.shape_cast %5 : vector<1x1x128x128xi8> to vector<128x128xi8>
    %7 = vector.shape_cast %4 : vector<128x128xi8> to vector<1x1x128x128xi8>
    tpu.vector_store %arg3[%c0_2, %c0_3, %c0_4, %c0_5], %7 {strides = array<i32>} : memref<1x4x128x128xi8, #tpu.memory_space<vmem>>, vector<1x1x128x128xi8>,
    %cst_6 = arith.constant 3.000000e-01 : f32
    %8 = vector.broadcast %cst_6 : f32 to vector<128x128xf32>
    %9 = arith.cmpf ogt, %1, %8 : vector<128x128xf32>
    %10 = arith.extui %9 : vector<128x128xi1> to vector<128x128xi8>
    %c0_7 = arith.constant 0 : index
    %c1 = arith.constant 1 : index
    %c0_8 = arith.constant 0 : index
    %c0_9 = arith.constant 0 : index
    %11 = vector.load %arg3[%c0_7, %c1, %c0_8, %c0_9] : memref<1x4x128x128xi8, #tpu.memory_space<vmem>>, vector<1x1x128x128xi8>
    %12 = vector.shape_cast %11 : vector<1x1x128x128xi8> to vector<128x128xi8>
    %13 = vector.shape_cast %10 : vector<128x128xi8> to vector<1x1x128x128xi8>
    tpu.vector_store %arg3[%c0_7, %c1, %c0_8, %c0_9], %13 {strides = array<i32>} : memref<1x4x128x128xi8, #tpu.memory_space<vmem>>, vector<1x1x128x128xi8>,
    %cst_10 = arith.constant 4.000000e-01 : f32
    %14 = vector.broadcast %cst_10 : f32 to vector<128x128xf32>
    %15 = arith.cmpf ogt, %1, %14 : vector<128x128xf32>
    %16 = arith.extui %15 : vector<128x128xi1> to vector<128x128xi8>
    %c0_11 = arith.constant 0 : index
    %c2 = arith.constant 2 : index
    %c0_12 = arith.constant 0 : index
    %c0_13 = arith.constant 0 : index
    %17 = vector.load %arg3[%c0_11, %c2, %c0_12, %c0_13] : memref<1x4x128x128xi8, #tpu.memory_space<vmem>>, vector<1x1x128x128xi8>
    %18 = vector.shape_cast %17 : vector<1x1x128x128xi8> to vector<128x128xi8>
    %19 = vector.shape_cast %16 : vector<128x128xi8> to vector<1x1x128x128xi8>
    tpu.vector_store %arg3[%c0_11, %c2, %c0_12, %c0_13], %19 {strides = array<i32>} : memref<1x4x128x128xi8, #tpu.memory_space<vmem>>, vector<1x1x128x128xi8>,
    %cst_14 = arith.constant 5.000000e-01 : f32
    %20 = vector.broadcast %cst_14 : f32 to vector<128x128xf32>
    %21 = arith.cmpf ogt, %1, %20 : vector<128x128xf32>
    %22 = arith.extui %21 : vector<128x128xi1> to vector<128x128xi8>
    %c0_15 = arith.constant 0 : index
    %c3 = arith.constant 3 : index
    %c0_16 = arith.constant 0 : index
    %c0_17 = arith.constant 0 : index
    %23 = vector.load %arg3[%c0_15, %c3, %c0_16, %c0_17] : memref<1x4x128x128xi8, #tpu.memory_space<vmem>>, vector<1x1x128x128xi8>
    %24 = vector.shape_cast %23 : vector<1x1x128x128xi8> to vector<128x128xi8>
    %25 = vector.shape_cast %22 : vector<128x128xi8> to vector<1x1x128x128xi8>
    tpu.vector_store %arg3[%c0_15, %c3, %c0_16, %c0_17], %25 {strides = array<i32>} : memref<1x4x128x128xi8, #tpu.memory_space<vmem>>, vector<1x1x128x128xi8>,
    return
  }
  func.func @transform_0(%arg0: i32, %arg1: i32) -> (i32, i32, i32) {
    %c0_i32 = arith.constant 0 : i32
    %c0_i32_0 = arith.constant 0 : i32
    return %arg0, %arg1, %c0_i32 : i32, i32, i32
  }
  func.func @transform_1(%arg0: i32, %arg1: i32) -> (i32, i32, i32, i32) {
    %c0_i32 = arith.constant 0 : i32
    %c0_i32_0 = arith.constant 0 : i32
    %c0_i32_1 = arith.constant 0 : i32
    return %arg0, %c0_i32, %arg1, %c0_i32_0 : i32, i32, i32, i32
  }
}

</mosaic_0001>

<bundles_post_ra>
// kernel: tpu_custom_call.1
= control target key start
LH: loop header
LB: loop body
LE: loop exit
PB: predicated region body
PF: predicated region fallthrough
CT: control target
= control target key end

     0   :  { %6 = vsyncpa [#allocation3], 0  ;;  %s978_s0 = inlined_call_operand.hbm [shape: f32[2,128,128], index: 0, kind: input, shape index: {}]   ;;  %s979_s1 = inlined_call_operand.hbm [shape: u8[2,4,128,128], index: 1, kind: output, shape index: {}]  }
   0x1   :  { %8 = vsyncpa [#allocation3 + $0x1], 0 }
   0x2   :  { %9 = vsyncpa [#allocation4], 0 }
   0x3   :  { %11 = vsyncpa [#allocation4 + $0x1], 0  ;;  %s650_s6 = smov 0   ;;  %s652_s7 = smov 0  }
   0x4   :  { %s654_s8 = smov 0   ;;  %s656_s9 = smov 0  }
   0x5   :  { %s658_s10 = smov 0   ;;  %s660_s11 = smov 0  }
   0x6 LB: > { %s423_s12 = sadd.s32 4294967295, %s631_s11   ;;  %s424_s13 = sadd.s32 4294967294, %s631_s11   ;;  %s631_s11 = sphi %s660_s11, %s17_s11   ;;  %s627_s10 = sphi %s658_s10, %s994_s10   ;;  %s623_s9 = sphi %s656_s9, %s993_s9   ;;  %s619_s8 = sphi %s654_s8, %s992_s8   ;;  %s615_s7 = sphi %s652_s7, %s991_s7   ;;  %s611_s6 = sphi %s650_s6, %s990_s6  }
   0x7   : > { %s29_s14 = sadd.s32 1, %s627_s10  ;;  %s38_s15 = sadd.s32 1, %s619_s8 }
   0x8   : > { %p31_p0 = scmp.ge.s32.totalorder %s29_s14, 2  ;;  %p45_p1 = scmp.ne.s32.totalorder %s619_s8, %s615_s7 }
   0x9   : > { %p46_p2 = scmp.eq.s32.totalorder %s631_s11, 0  ;;  %p51_p3 = scmp.ne.s32.totalorder %s615_s7, %s611_s6 }
   0xa   : > { %s996_s14 = smov (%p31_p0, %s29_s14), 0  ;;  %p52_p5 = scmp.eq.s32.totalorder %s423_s12, 0 }
   0xb   : > { %p691_p4 = por %p46_p2, %p45_p1  ;;  %s33_s17 = ssub.s32 %s627_s10, %s996_s14 }
   0xc   : > { %p77_p6 = scmp.eq.s32.totalorder %s423_s12, 1  ;;  %p36_p7 = scmp.eq.s32.totalorder %s33_s17, 0 }
   0xd   : > { %p697_p8 = por %p52_p5, %p51_p3  ;;  %p83_p10 = scmp.eq.s32.totalorder %s424_s13, 1 }
   0xe   : > { %p701_p9 = por %p77_p6, %p45_p1  ;;  %p464_p13 = scmp.lt.s32.totalorder %s631_s11, 2 }
   0xf   : > { %s706_s20 = scalar_select %p36_p7, %s619_s8, %s38_s15  }
  0x10   : > { %s983_s19 = scalar_select %p701_p9, 1, 0 }
  0x11   : > { %p708_p11 = por %p83_p10, %p51_p3  ;;  %s103_s22 = sand.u32 1, %s619_s8  }
  0x12   : > { %s427_s23 = sshll.u32 %s103_s22, 7  ;;  %s450_s24 = sshll.u32 %s627_s10, 11 }
  0x13   : > { %s984_s21 = scalar_select %p708_p11, 1, 0 }
  0x14   : > { %s719_s27 = scalar_lea.hbm %s978_s0, %s450_s24  ;;  %s107_s28 = scalar_lea.vmem [#allocation2], %s427_s23 }
  0x15   : > { %s116_s29 = sshll.u32 %s107_s28, 4  ;;  %p725_p0 = pnand %p464_p13, %p691_p4  ;;  %s721_s29 = int_to_ptr.vmem [resolvable:$true] %s116_s29 }
  0x16   : > { %s730_s2 = scalar_lea.sflag [#allocation3], %s103_s22  ;;  %s519_s3 = scalar_lea.hbm %s719_s27, 2048 }
  0x17   : > { %p520_p2 = scmp.ne.s32.totalorder %s719_s27, %s519_s3  ;;  %p521_p3 = pneg %p725_p0 }
  0x18   : > { %s524_s12 = scalar_lea.hbm %s978_s0, 4096  ;;  %p525_p4 = scmp.lt.u32.totalorder %s719_s27, %s978_s0 }
  0x19   : > { %p522_p5 = pnand %p521_p3, %p520_p2  ;;  %p526_p7 = scmp.lt.u32.totalorder %s524_s12, %s519_s3 }
  0x1a   : > { %p528_p13 = scmp.lt.u32.totalorder %s519_s3, %s719_s27 }
  0x1b   : > { %p523_p6 = pneg %p522_p5  ;;  %p527_p10 = por %p526_p7, %p525_p4 }
  0x1d   : > { %p529_p12 = por %p528_p13, %p527_p10 }
  0x1f   : > { %p530_p1 = pnand %p529_p12, %p523_p6 }
  0x21   : > { %533 = shalt.err (!%p530_p1)
}
  0x22   : > { %s534_s16 = scalar_lea.vmem %s721_s29, 2048  ;;  %s633_s17 = smov [#allocation2]  }
  0x23   : > { %p535_p2 = scmp.ne.s32.totalorder %s721_s29, %s534_s16  ;;  %s539_s22 = sshll.u32 %s633_s17, 4  ;;  %s540_s22 = int_to_ptr.vmem [resolvable:$false] %s539_s22 }
  0x24   : > { %s541_s23 = scalar_lea.vmem %s540_s22, 4096  ;;  %p542_p9 = scmp.lt.s32.totalorder %s721_s29, %s540_s22 }
  0x25   : > { %p537_p5 = pnand %p535_p2, %p521_p3  ;;  %p543_p4 = scmp.lt.s32.totalorder %s541_s23, %s534_s16 }
  0x27   : > { %p538_p11 = pneg %p537_p5  ;;  %p544_p7 = por %p543_p4, %p542_p9 }
  0x29   : > { %p545_p10 = pnand %p544_p7, %p538_p11 }
  0x2b   : > { %548 = shalt.err (!%p545_p10)
}
  0x2c   : > { %s634_s24 = smov 128   ;;  %s635_s25 = smov 8  }
  0x2d   : > { %459 = dma.hbm_to_vmem [thread:$0]  (!%p725_p0), %s719_s27, 2048, %s721_s29, %s730_s2, %s634_s24, %s634_s24, %s635_s25  }
  0x2e   : > { %p124_p12 = scmp.lt.s32.totalorder %s631_s11, 3  ;;  %p986_p1 = scmp.ge.s32.totalorder %s631_s11, 1 }
  0x30   : > { %p125_p3 = pnand %p986_p1, %p124_p12 }
  0x31   : > { %s762_s26 = sand.u32 (!%p125_p3), 1, %s615_s7  }
  0x32   : > { %128 = sbr.rel (%p125_p3) target bundleno = 124 (0x7c), region = 24  ;;  %s431_s28 = sshll.u32 (!%p125_p3), %s762_s26, 7 }
  0x33   : > { %s131_s3 = scalar_lea.sflag (!%p125_p3), [#allocation3], %s762_s26  ;;  %s768_s4 = scalar_lea.vmem (!%p125_p3), [#allocation2], %s431_s28 }
  0x39   : > { %602 = dma.done.wait (%p697_p8), %s131_s3, 2048  }
  0x3a   : > { %604 = vsyncadd (%p697_p8), %s131_s3, 4294965248  ;;  %v775_v0 = vld [vmem:[%s768_s4] sm:$0xff]  ;;  %v778_v1 = vld [vmem:[%s768_s4 + $0x8] sm:$0xff]  ;;  %v636_v11 = vmov 0   ;;  %s825_s18 = scalar_lea.vmem [#allocation5], %s431_s28  ;;  %s451_s27 = sshll.u32 %s623_s9, 11 }
  0x3b   : > { %v781_v2 = vld [vmem:[%s768_s4 + $0x10] sm:$0xff]  ;;  %v784_v3 = vld [vmem:[%s768_s4 + $0x18] sm:$0xff]  ;;  %vm173_vm0 = vcmp.gt.f32.partialorder %v775_v0, 0.2  ;;  %vm174_vm1 = vcmp.gt.f32.partialorder %v778_v1, 0.2  ;;  %s925_s5 = scalar_lea.hbm %s979_s1, %s451_s27 }
  0x3c   : > { %v789_v4 = vld [vmem:[%s768_s4 + $0x20] sm:$0xff]  ;;  %vm175_vm2 = vcmp.gt.f32.partialorder %v781_v2, 0.2  ;;  %vm176_vm3 = vcmp.gt.f32.partialorder %v784_v3, 0.2  ;;  %vm189_vm4 = vmpackc.low %vm174_vm1, %vm173_vm0  ;;  %v794_v5 = vld [vmem:[%s768_s4 + $0x28] sm:$0xff] }
  0x3d   : > { %v797_v6 = vld [vmem:[%s768_s4 + $0x30] sm:$0xff]  ;;  %vm190_vm5 = vmpackc.low %vm176_vm3, %vm175_vm2  ;;  %v800_v7 = vld [vmem:[%s768_s4 + $0x38] sm:$0xff]  ;;  %vm177_vm6 = vcmp.gt.f32.partialorder %v789_v4, 0.2  ;;  %vm178_vm7 = vcmp.gt.f32.partialorder %v794_v5, 0.2 }
  0x3e   : > { %v805_v8 = vld [vmem:[%s768_s4 + $0x40] sm:$0xff]  ;;  %vm191_vm8 = vmpackc.even %vm190_vm5, %vm189_vm4  ;;  %vm179_vm9 = vcmp.gt.f32.partialorder %v797_v6, 0.2  ;;  %vm180_vm10 = vcmp.gt.f32.partialorder %v800_v7, 0.2  ;;  %v810_v9 = vld [vmem:[%s768_s4 + $0x48] sm:$0xff] }
  0x3f   : > { %v813_v10 = vld [vmem:[%s768_s4 + $0x50] sm:$0xff]  ;;  %v201_v12 = vsel %vm191_vm8, 16843009, %v636_v11  ;;  %vm192_vm11 = vmpackc.low %vm178_vm7, %vm177_vm6  ;;  %v817_v13 = vld [vmem:[%s768_s4 + $0x58] sm:$0xff]  ;;  %vm181_vm12 = vcmp.gt.f32.partialorder %v805_v8, 0.2 }
  0x40   : > { %v821_v14 = vld [vmem:[%s768_s4 + $0x60] sm:$0xff]  ;;  %205 = vst [vmem:[%s825_s18] sm:$0xff] %v201_v12  ;;  %vm193_vm13 = vmpackc.low %vm180_vm10, %vm179_vm9  ;;  %vm182_vm14 = vcmp.gt.f32.partialorder %v810_v9, 0.2  ;;  %vm183_vm15 = vcmp.gt.f32.partialorder %v813_v10, 0.2  ;;  %v832_v15 = vld [vmem:[%s768_s4 + $0x68] sm:$0xff] }
  0x41   : > { %vm184_vm0 = vcmp.gt.f32.partialorder %v817_v13, 0.2  ;;  %vm194_vm1 = vmpackc.even %vm193_vm13, %vm192_vm11  ;;  %v835_v16 = vld [vmem:[%s768_s4 + $0x70] sm:$0xff]  ;;  %vm185_vm2 = vcmp.gt.f32.partialorder %v821_v14, 0.2  ;;  %v840_v18 = vld [vmem:[%s768_s4 + $0x78] sm:$0xff] }
  0x42   : > { %v202_v17 = vsel %vm194_vm1, 16843009, %v636_v11  ;;  %vm195_vm3 = vmpackc.low %vm182_vm14, %vm181_vm12  ;;  %vm186_vm4 = vcmp.gt.f32.partialorder %v832_v15, 0.2  ;;  %vm187_vm6 = vcmp.gt.f32.partialorder %v835_v16, 0.2 }
  0x43   : > { %206 = vst [vmem:[%s825_s18 + $0x8] sm:$0xff] %v202_v17  ;;  %vm196_vm5 = vmpackc.low %vm184_vm0, %vm183_vm15  ;;  %vm188_vm7 = vcmp.gt.f32.partialorder %v840_v18, 0.2  ;;  %vm209_vm10 = vcmp.gt.f32.partialorder %v775_v0, 0.3  ;;  %s336_s29 = sshll.u32 %s825_s18, 4  ;;  %s927_s29 = int_to_ptr.vmem [resolvable:$true] %s336_s29 }
  0x44   : > { %vm197_vm8 = vmpackc.even %vm196_vm5, %vm195_vm3  ;;  %vm210_vm11 = vcmp.gt.f32.partialorder %v778_v1, 0.3  ;;  %vm211_vm13 = vcmp.gt.f32.partialorder %v781_v2, 0.3  ;;  %vm212_vm14 = vcmp.gt.f32.partialorder %v784_v3, 0.3 }
  0x45   : > { %v203_v19 = vsel %vm197_vm8, 16843009, %v636_v11  ;;  %vm198_vm9 = vmpackc.low %vm186_vm4, %vm185_vm2  ;;  %vm213_vm1 = vcmp.gt.f32.partialorder %v789_v4, 0.3  ;;  %vm214_vm3 = vcmp.gt.f32.partialorder %v794_v5, 0.3 }
  0x46   : > { %207 = vst [vmem:[%s825_s18 + $0x10] sm:$0xff] %v203_v19  ;;  %vm199_vm12 = vmpackc.low %vm188_vm7, %vm187_vm6  ;;  %vm215_vm4 = vcmp.gt.f32.partialorder %v797_v6, 0.3  ;;  %vm216_vm5 = vcmp.gt.f32.partialorder %v800_v7, 0.3  ;;  %s321_s9 = scalar_lea.sflag [#allocation4], %s762_s26 }
  0x47   : > { %vm200_vm15 = vmpackc.even %vm199_vm12, %vm198_vm9  ;;  %vm217_vm8 = vcmp.gt.f32.partialorder %v805_v8, 0.3  ;;  %vm218_vm9 = vcmp.gt.f32.partialorder %v810_v9, 0.3  ;;  %vm220_vm12 = vcmp.gt.f32.partialorder %v817_v13, 0.3 }
  0x48   : > { %v204_v20 = vsel %vm200_vm15, 16843009, %v636_v11  ;;  %vm225_vm0 = vmpackc.low %vm210_vm11, %vm209_vm10  ;;  %vm219_vm11 = vcmp.gt.f32.partialorder %v813_v10, 0.3  ;;  %vm221_vm15 = vcmp.gt.f32.partialorder %v821_v14, 0.3 }
  0x49   : > { %208 = vst [vmem:[%s825_s18 + $0x18] sm:$0xff] %v204_v20  ;;  %vm226_vm2 = vmpackc.low %vm212_vm14, %vm211_vm13  ;;  %s549_s12 = scalar_lea.vmem %s927_s29, 2048  ;;  %p987_p9 = scmp.ne.s32.totalorder %s983_s19, 0 }
  0x4a   : > { %vm227_vm6 = vmpackc.even %vm226_vm2, %vm225_vm0  ;;  %vm222_vm0 = vcmp.gt.f32.partialorder %v832_v15, 0.3  ;;  %vm224_vm2 = vcmp.gt.f32.partialorder %v840_v18, 0.3  ;;  %p550_p8 = scmp.ne.s32.totalorder %s927_s29, %s549_s12  ;;  %s637_s13 = smov [#allocation5]  }
  0x4b   : > { %v237_v21 = vsel %vm227_vm6, 16843009, %v636_v11  ;;  %vm228_vm7 = vmpackc.low %vm214_vm3, %vm213_vm1  ;;  %vm223_vm3 = vcmp.gt.f32.partialorder %v835_v16, 0.3  ;;  %vm246_vm6 = vcmp.gt.f32.partialorder %v775_v0, 0.4 }
  0x4c   : > { %433 = vst [vmem:[%s825_s18 + $0x20] sm:$0xff] %v237_v21  ;;  %vm229_vm10 = vmpackc.low %vm216_vm5, %vm215_vm4  ;;  %p551_p11 = pnand %p550_p8, %p987_p9  ;;  %s553_s15 = sshll.u32 %s637_s13, 4  ;;  %s554_s15 = int_to_ptr.vmem [resolvable:$false] %s553_s15 }
  0x4d   : > { %vm230_vm13 = vmpackc.even %vm229_vm10, %vm228_vm7  ;;  %vm247_vm7 = vcmp.gt.f32.partialorder %v778_v1, 0.4  ;;  %vm249_vm10 = vcmp.gt.f32.partialorder %v784_v3, 0.4  ;;  %s555_s16 = scalar_lea.vmem %s554_s15, 4096  ;;  %p556_p6 = scmp.lt.s32.totalorder %s927_s29, %s554_s15 }
  0x4e   : > { %v238_v22 = vsel %vm230_vm13, 16843009, %v636_v11  ;;  %vm231_vm14 = vmpackc.low %vm218_vm9, %vm217_vm8  ;;  %vm248_vm9 = vcmp.gt.f32.partialorder %v781_v2, 0.4  ;;  %vm250_vm13 = vcmp.gt.f32.partialorder %v789_v4, 0.4  ;;  %p552_p0 = pneg %p551_p11  ;;  %p557_p13 = scmp.lt.s32.totalorder %s555_s16, %s549_s12 }
  0x4f   : > { %434 = vst [vmem:[%s825_s18 + $0x28] sm:$0xff] %v238_v22  ;;  %vm232_vm1 = vmpackc.low %vm220_vm12, %vm219_vm11 }
  0x50   : > { %vm233_vm4 = vmpackc.even %vm232_vm1, %vm231_vm14  ;;  %vm251_vm14 = vcmp.gt.f32.partialorder %v794_v5, 0.4  ;;  %vm253_vm1 = vcmp.gt.f32.partialorder %v800_v7, 0.4  ;;  %p558_p2 = por %p557_p13, %p556_p6 }
  0x51   : > { %v239_v23 = vsel %vm233_vm4, 16843009, %v636_v11  ;;  %vm234_vm5 = vmpackc.low %vm222_vm0, %vm221_vm15  ;;  %vm252_vm0 = vcmp.gt.f32.partialorder %v797_v6, 0.4  ;;  %vm254_vm4 = vcmp.gt.f32.partialorder %v805_v8, 0.4 }
  0x52   : > { %435 = vst [vmem:[%s825_s18 + $0x30] sm:$0xff] %v239_v23  ;;  %vm235_vm8 = vmpackc.low %vm224_vm2, %vm223_vm3  ;;  %p559_p5 = pnand %p558_p2, %p552_p0 }
  0x53   : > { %vm236_vm11 = vmpackc.even %vm235_vm8, %vm234_vm5  ;;  %vm255_vm5 = vcmp.gt.f32.partialorder %v810_v9, 0.4  ;;  %vm257_vm8 = vcmp.gt.f32.partialorder %v817_v13, 0.4 }
  0x54   : > { %v240_v24 = vsel %vm236_vm11, 16843009, %v636_v11  ;;  %vm262_vm12 = vmpackc.low %vm247_vm7, %vm246_vm6  ;;  %vm256_vm7 = vcmp.gt.f32.partialorder %v813_v10, 0.4  ;;  %vm258_vm11 = vcmp.gt.f32.partialorder %v821_v14, 0.4 }
  0x55   : > { %436 = vst [vmem:[%s825_s18 + $0x38] sm:$0xff] %v240_v24  ;;  %vm263_vm15 = vmpackc.low %vm249_vm10, %vm248_vm9 }
  0x56   : > { %vm264_vm3 = vmpackc.even %vm263_vm15, %vm262_vm12  ;;  %vm259_vm12 = vcmp.gt.f32.partialorder %v832_v15, 0.4  ;;  %vm261_vm15 = vcmp.gt.f32.partialorder %v840_v18, 0.4 }
  0x57   : > { %v274_v25 = vsel %vm264_vm3, 16843009, %v636_v11  ;;  %vm265_vm2 = vmpackc.low %vm251_vm14, %vm250_vm13  ;;  %vm260_vm14 = vcmp.gt.f32.partialorder %v835_v16, 0.4  ;;  %vm283_vm3 = vcmp.gt.f32.partialorder %v775_v0, 0.5 }
  0x58   : > { %437 = vst [vmem:[%s825_s18 + $0x40] sm:$0xff] %v274_v25  ;;  %vm266_vm6 = vmpackc.low %vm253_vm1, %vm252_vm0 }
  0x59   : > { %vm267_vm9 = vmpackc.even %vm266_vm6, %vm265_vm2  ;;  %vm284_vm2 = vcmp.gt.f32.partialorder %v778_v1, 0.5  ;;  %vm286_vm6 = vcmp.gt.f32.partialorder %v784_v3, 0.5 }
  0x5a   : > { %v275_v26 = vsel %vm267_vm9, 16843009, %v636_v11  ;;  %vm268_vm10 = vmpackc.low %vm255_vm5, %vm254_vm4  ;;  %vm285_vm5 = vcmp.gt.f32.partialorder %v781_v2, 0.5  ;;  %vm287_vm9 = vcmp.gt.f32.partialorder %v789_v4, 0.5 }
  0x5b   : > { %438 = vst [vmem:[%s825_s18 + $0x48] sm:$0xff] %v275_v26  ;;  %vm269_vm13 = vmpackc.low %vm257_vm8, %vm256_vm7 }
  0x5c   : > { %vm270_vm0 = vmpackc.even %vm269_vm13, %vm268_vm10  ;;  %vm288_vm10 = vcmp.gt.f32.partialorder %v794_v5, 0.5  ;;  %vm290_vm13 = vcmp.gt.f32.partialorder %v800_v7, 0.5 }
  0x5d   : > { %v276_v27 = vsel %vm270_vm0, 16843009, %v636_v11  ;;  %vm271_vm1 = vmpackc.low %vm259_vm12, %vm258_vm11  ;;  %vm289_vm12 = vcmp.gt.f32.partialorder %v797_v6, 0.5  ;;  %vm291_vm0 = vcmp.gt.f32.partialorder %v805_v8, 0.5 }
  0x5e   : > { %439 = vst [vmem:[%s825_s18 + $0x50] sm:$0xff] %v276_v27  ;;  %vm272_vm4 = vmpackc.low %vm261_vm15, %vm260_vm14 }
  0x5f   : > { %vm273_vm7 = vmpackc.even %vm272_vm4, %vm271_vm1  ;;  %vm292_vm1 = vcmp.gt.f32.partialorder %v810_v9, 0.5  ;;  %vm294_vm4 = vcmp.gt.f32.partialorder %v817_v13, 0.5 }
  0x60   : > { %v277_v28 = vsel %vm273_vm7, 16843009, %v636_v11  ;;  %vm299_vm8 = vmpackc.low %vm284_vm2, %vm283_vm3  ;;  %vm293_vm2 = vcmp.gt.f32.partialorder %v813_v10, 0.5  ;;  %vm295_vm7 = vcmp.gt.f32.partialorder %v821_v14, 0.5 }
  0x61   : > { %440 = vst [vmem:[%s825_s18 + $0x58] sm:$0xff] %v277_v28  ;;  %vm300_vm11 = vmpackc.low %vm286_vm6, %vm285_vm5 }
  0x62   : > { %vm301_vm14 = vmpackc.even %vm300_vm11, %vm299_vm8  ;;  %vm296_vm8 = vcmp.gt.f32.partialorder %v832_v15, 0.5  ;;  %vm298_vm11 = vcmp.gt.f32.partialorder %v840_v18, 0.5 }
  0x63   : > { %v311_v29 = vsel %vm301_vm14, 16843009, %v636_v11  ;;  %vm302_vm15 = vmpackc.low %vm288_vm10, %vm287_vm9  ;;  %vm297_vm10 = vcmp.gt.f32.partialorder %v835_v16, 0.5 }
  0x64   : > { %441 = vst [vmem:[%s825_s18 + $0x60] sm:$0xff] %v311_v29  ;;  %vm303_vm3 = vmpackc.low %vm290_vm13, %vm289_vm12 }
  0x65   : > { %vm304_vm5 = vmpackc.even %vm303_vm3, %vm302_vm15 }
  0x66   : > { %v312_v30 = vsel %vm304_vm5, 16843009, %v636_v11  ;;  %vm305_vm6 = vmpackc.low %vm292_vm1, %vm291_vm0 }
  0x67   : > { %442 = vst [vmem:[%s825_s18 + $0x68] sm:$0xff] %v312_v30  ;;  %vm306_vm9 = vmpackc.low %vm294_vm4, %vm293_vm2 }
  0x68   : > { %vm307_vm12 = vmpackc.even %vm306_vm9, %vm305_vm6 }
  0x69   : > { %v313_v31 = vsel %vm307_vm12, 16843009, %v636_v11  ;;  %vm308_vm13 = vmpackc.low %vm296_vm8, %vm295_vm7 }
  0x6a   : > { %443 = vst [vmem:[%s825_s18 + $0x70] sm:$0xff] %v313_v31  ;;  %vm309_vm14 = vmpackc.low %vm298_vm11, %vm297_vm10 }
  0x6b   : > { %vm310_vm15 = vmpackc.even %vm309_vm14, %vm308_vm13 }
  0x6c   : > { %v314_v32 = vsel %vm310_vm15, 16843009, %v636_v11 }
  0x6d   : > { %444 = vst [vmem:[%s825_s18 + $0x78] sm:$0xff] %v314_v32 }
  0x6e   : > { %562 = shalt.err (!%p559_p5)
}
  0x6f   : > { %s563_s17 = scalar_lea.hbm %s925_s5, 2048  ;;  %s567_s24 = scalar_lea.hbm %s979_s1, 4096 }
  0x70   : > { %p564_p4 = scmp.ne.s32.totalorder %s925_s5, %s563_s17  ;;  %p568_p12 = scmp.lt.u32.totalorder %s925_s5, %s979_s1 }
  0x71   : > { %p569_p1 = scmp.lt.u32.totalorder %s567_s24, %s563_s17  ;;  %p571_p8 = scmp.lt.u32.totalorder %s563_s17, %s925_s5 }
  0x72   : > { %p565_p7 = pnand %p564_p4, %p987_p9 }
  0x73   : > { %p570_p3 = por %p569_p1, %p568_p12 }
  0x74   : > { %p566_p10 = pneg %p565_p7 }
  0x75   : > { %p572_p11 = por %p571_p8, %p570_p3 }
  0x77   : > { %p573_p0 = pnand %p572_p11, %p566_p10 }
  0x79   : > { %576 = shalt.err (!%p573_p0)
}
  0x7a   : > { %s638_s3 = smov 128   ;;  %s639_s4 = smov 8  }
  0x7b   : > { %454 = dma.vmem_to_hbm [thread:$0]  (%p987_p9), %s927_s29, 2048, %s925_s5, %s321_s9, %s638_s3, %s638_s3, %s639_s4  }
  0x7c PF: > { %s351_s18 = sand.u32 1, %s611_s6   ;;  %p988_p6 = scmp.ne.s32.totalorder %s984_s21, 0 }
  0x7d   : > { %p989_p13 = scmp.ge.s32.totalorder %s631_s11, 2  ;;  %s352_s27 = scalar_lea.sflag [#allocation4], %s351_s18 }
  0x7f   : > { %p461_p2 = pnand %p989_p13, %p988_p6 }
  0x81   : > { %606 = dma.done.wait (!%p461_p2), %s352_s27, 2048  }
  0x82   : > { %608 = vsyncadd (!%p461_p2), %s352_s27, 4294965248  ;;  %s17_s11 = sadd.s32 1, %s631_s11   ;;  %s990_s6 = smov %s615_s7 }
  0x83   : > { %p14_p5 = scmp.ge.s32.totalorder %s17_s11, 4   ;;  %s991_s7 = smov %s619_s8 }
  0x84   : > { %s992_s8 = smov %s706_s20  ;;  %s993_s9 = smov %s627_s10 }
  0x85   : > { %s994_s10 = smov %s996_s14  ;;  %16 = sbr.rel (!%p14_p5) target bundleno = 6 (0x6), region = 72 }
  0x8c   :  { %357 = vsyncpa [#allocation3], 1 }
  0x8d   :  { %359 = vsyncpa [#allocation3 + $0x1], 1 }
  0x8e   :  { %360 = vsyncpa [#allocation4], 1 }
  0x8f   :  { %362 = vsyncpa [#allocation4 + $0x1], 1 }

</bundles_post_ra>
